<compile_context>
chip_gen: v6e
topology: v6e:2x2x1
jax: 0.10.0
libtpu: 0.0.40
codegen_flags: <defaults>
</compile_context>

<pallas_src>
import functools

import jax
import jax.numpy as jnp
from jax.experimental import pallas as pl
from jax.experimental.pallas import tpu as pltpu


def _round_up(x, m):
    return (x + m - 1) // m * m


def _fused_wmse_kernel(*refs, n_preds, rows, hw, tr, tl,
                       need_row_mask, need_col_mask):
    """One grid step = one (tr, tl) chunk of the flattened (rows, hw) heatmaps.

    refs = (gt_ref, w_ref, pred_ref_0..pred_ref_{n-1}, out_ref)
      gt_ref     : (tr, tl)       native dtype
      w_ref      : (tr, 1)        f32 per-row target weight
      pred_ref_k : (tr, tl)       native dtype (main + aux heads)
      out_ref    : (1, 1, 8, 128) f32 lane-dense per-chunk partial sum
    """
    gt_ref, w_ref = refs[0], refs[1]
    pred_refs = refs[2:2 + n_preds]
    out_ref = refs[2 + n_preds]

    g = gt_ref[...].astype(jnp.float32)

    if need_col_mask:
        col = jax.lax.broadcasted_iota(jnp.int32, (1, tl), 1)
        col_mask = (pl.program_id(1) * tl + col) < hw

    # Weight hoisted out of the elementwise path: accumulate per-row sums of
    # (p - g)^2, scale once by w^2 at the end of the chunk.
    row_acc = jnp.zeros((tr, 1), jnp.float32)
    for p_ref in pred_refs:
        diff = p_ref[...].astype(jnp.float32) - g
        d2 = diff * diff
        if need_col_mask:
            # Mask ragged lane tail BEFORE accumulation (OOB lanes hold
            # unspecified data).
            d2 = jnp.where(col_mask, d2, 0.0)
        row_acc = row_acc + jnp.sum(d2, axis=1, keepdims=True)

    w = w_ref[...].astype(jnp.float32)
    per_row = row_acc * (w * w)
    if need_row_mask:
        # Mask ragged row tail (OOB rows hold unspecified data) before sum.
        rid = jax.lax.broadcasted_iota(jnp.int32, (tr, 1), 0)
        per_row = jnp.where((pl.program_id(0) * tr + rid) < rows, per_row, 0.0)

    total = jnp.sum(per_row)
    out_ref[...] = jnp.broadcast_to(total, out_ref.shape).astype(jnp.float32)


def _vmem_budget():
    """(vmem_limit_bytes, double-buffered tile budget) tuned per generation."""
    try:
        info = pltpu.get_tpu_info()
        phys = int(getattr(info, "vmem_capacity_bytes", 64 * 1024 * 1024))
    except Exception:
        phys = 64 * 1024 * 1024  # conservative (v7x-sized) fallback
    # v7x (64 MiB physical) -> 48 MiB limit / 24 MiB tile budget;
    # v5e/v6e (128 MiB)     -> 96 MiB limit / 48 MiB tile budget.
    limit = min(96 * 1024 * 1024, max(32 * 1024 * 1024, (phys * 3) // 4))
    return limit, limit // 2


def _select_tiles(rows, hw, n_preds, isz_gt, isz_p, budget):
    """Pick (tr, tl) row/lane tile sizes within the VMEM budget."""
    # Per-element cost: double-buffered input tiles (real itemsize) plus
    # headroom for the in-kernel f32 temporaries (g, diff, d2).
    per_elem = 2 * (isz_gt + n_preds * isz_p) + 3 * 4
    # Per-row constant: double-buffered (tr, 1) weight tile (lane-padded to
    # 128), the (tr, 1) accumulator and mask columns.
    per_row_const = 4 * 128 * 4

    def max_rows(lane_tile):
        return (budget // (per_elem * lane_tile + per_row_const) // 8) * 8

    tl = hw
    tr = max_rows(tl)
    if tr < 8:
        # hw too wide to fit even 8 rows: split the lane axis (2-D grid).
        tl = (budget - 8 * per_row_const) // (8 * per_elem)
        tl = max(128, (tl // 128) * 128)
        tl = min(tl, _round_up(hw, 128))
        tr = max(8, max_rows(tl))
    # v7x: keep >= 2 row chunks whenever possible so both TensorCores get work.
    if rows > 8:
        tr = min(tr, max(8, _round_up((rows + 1) // 2, 8)))
    tr = min(tr, _round_up(rows, 8), 4096)
    tr = max(8, tr)
    return tr, tl


def _fused_weighted_mse_sum(pred_list, gt2d, w2d, *, rows, hw):
    """sum over heads h, rows r, lanes c of (w_r * (pred_h - gt))^2."""
    n_preds = len(pred_list)
    isz_gt = jnp.dtype(gt2d.dtype).itemsize
    isz_p = jnp.dtype(pred_list[0].dtype).itemsize

    vmem_limit, budget = _vmem_budget()
    tr, tl = _select_tiles(rows, hw, n_preds, isz_gt, isz_p, budget)
    ni = pl.cdiv(rows, tr)
    nj = pl.cdiv(hw, tl)

    kernel = functools.partial(
        _fused_wmse_kernel, n_preds=n_preds, rows=rows, hw=hw, tr=tr, tl=tl,
        need_row_mask=(rows % tr) != 0, need_col_mask=(hw % tl) != 0)

    heat_spec = pl.BlockSpec((tr, tl), lambda i, j: (i, j))
    in_specs = ([heat_spec, pl.BlockSpec((tr, 1), lambda i, j: (i, 0))]
                + [heat_spec] * n_preds)

    out = pl.pallas_call(
        kernel,
        out_shape=jax.ShapeDtypeStruct((ni, nj, 8, 128), jnp.float32),
        grid=(ni, nj),
        in_specs=in_specs,
        out_specs=pl.BlockSpec((1, 1, 8, 128), lambda i, j: (i, j, 0, 0)),
        compiler_params=pltpu.CompilerParams(
            dimension_semantics=("parallel", "parallel"),
            vmem_limit_bytes=vmem_limit),
    )(gt2d, w2d, *pred_list)

    # Every element of a chunk's output block holds the same partial sum.
    return jnp.sum(out[:, :, 0, 0])


def base_pos_loss(outputs, target, target_weight, *, use_target_weight=True,
                  cfg=None):
    """JAX/Pallas equivalent of BasePosLoss.forward.

    outputs: dict with 'pred_masks' (B, J, H, W) and optional 'aux_outputs'
             (list of dicts with 'pred_masks').
    target:  (B, J, H, W)
    target_weight: (B, J) or (B, J, 1)
    """
    output = outputs["pred_masks"]
    B, J = int(output.shape[0]), int(output.shape[1])
    hw = 1
    for s in output.shape[2:]:
        hw *= int(s)
    rows = B * J

    # Free, contiguous reshapes -- no transposes, no wrapper-side heatmap
    # casts or padding (casting / tail masking happens inside the kernel).
    pred_list = [output.reshape(rows, hw)]
    cfg = cfg or {}
    if "aux_outputs" in outputs and cfg.get("aux_loss", True):
        for aux in outputs["aux_outputs"]:
            pred_list.append(aux["pred_masks"].reshape(rows, hw))

    gt2d = target.reshape(rows, hw)
    if use_target_weight:
        w2d = target_weight.reshape(rows, 1).astype(jnp.float32)
    else:
        w2d = jnp.ones((rows, 1), jnp.float32)

    total = _fused_weighted_mse_sum(pred_list, gt2d, w2d, rows=rows, hw=hw)
    # Per-joint mean divides by B*HW; the whole thing is divided by J.
    return total / jnp.float32(B * hw * J)


def _reference_loss(outputs, target, target_weight, use_target_weight=True,
                    cfg=None):
    """Pure-JAX reference reproducing the PyTorch loop semantics."""
    output = outputs["pred_masks"]
    B, J = output.shape[0], output.shape[1]
    gt = target.reshape(B, J, -1).astype(jnp.float32)
    tw = target_weight.reshape(B, J, 1).astype(jnp.float32)

    def get_loss(pred):
        pred = pred.reshape(B, J, -1).astype(jnp.float32)
        total = jnp.float32(0.0)
        for idx in range(J):
            hp = pred[:, idx, :]
            hg = gt[:, idx, :]
            if use_target_weight:
                w = tw[:, idx]          # (B, 1)
                total = total + jnp.mean((hp * w - hg * w) ** 2)
            else:
                total = total + jnp.mean((hp - hg) ** 2)
        return total

    loss = get_loss(outputs["pred_masks"])
    cfg = cfg or {}
    if "aux_outputs" in outputs and cfg.get("aux_loss", True):
        for aux in outputs["aux_outputs"]:
            loss = loss + get_loss(aux["pred_masks"])
    return loss / J


if __name__ == "__main__":
    key = jax.random.PRNGKey(0)
    k1, k2, k3, k4, k5, k6, k7 = jax.random.split(key, 7)

    # --- Test 1: aligned shapes (rows % 8 == 0, hw % 128 == 0), one aux head.
    B, J, H, W = 2, 4, 16, 16
    pred_masks = jax.random.normal(k1, (B, J, H, W), dtype=jnp.float32)
    target = jax.random.normal(k2, (B, J, H, W), dtype=jnp.float32)
    target_weight = jax.random.uniform(k3, (B, J, 1), dtype=jnp.float32)
    aux_pred = jax.random.normal(k4, (B, J, H, W), dtype=jnp.float32)
    outputs = {"pred_masks": pred_masks, "aux_outputs": [{"pred_masks": aux_pred}]}
    cfg = {"aux_loss": True}

    loss = jax.block_until_ready(
        base_pos_loss(outputs, target, target_weight,
                      use_target_weight=True, cfg=cfg))
    ref = jax.block_until_ready(
        _reference_loss(outputs, target, target_weight, True, cfg))
    assert jnp.allclose(loss, ref, rtol=1e-4, atol=1e-5), (loss, ref)

    # --- Test 2: ragged shapes (rows % 8 != 0, hw % 128 != 0) exercise the
    # in-kernel tail masks; target_weight given as (B, J).
    B2, J2, H2, W2 = 3, 3, 12, 12
    pred2 = jax.random.normal(k5, (B2, J2, H2, W2), dtype=jnp.float32)
    tgt2 = jax.random.normal(k6, (B2, J2, H2, W2), dtype=jnp.float32)
    tw2 = jax.random.uniform(k7, (B2, J2), dtype=jnp.float32)
    outputs2 = {"pred_masks": pred2}

    loss2 = jax.block_until_ready(
        base_pos_loss(outputs2, tgt2, tw2, use_target_weight=True, cfg=cfg))
    ref2 = jax.block_until_ready(
        _reference_loss(outputs2, tgt2, tw2, True, cfg))
    assert jnp.allclose(loss2, ref2, rtol=1e-4, atol=1e-5), (loss2, ref2)

    print("KERNEL_OK")
</pallas_src>

<mosaic_0001>
module attributes {stable_mosaic.version = 11 : i64} {
  func.func @_fused_wmse_kernel(%arg0: i32, %arg1: i32, %arg2: memref<8x256xf32, #tpu.memory_space<vmem>>, %arg3: memref<8x1xf32, #tpu.memory_space<vmem>>, %arg4: memref<8x256xf32, #tpu.memory_space<vmem>>, %arg5: memref<8x256xf32, #tpu.memory_space<vmem>>, %arg6: memref<1x1x8x128xf32, #tpu.memory_space<vmem>>) attributes {dimension_semantics = [#tpu.dimension_semantics<parallel>, #tpu.dimension_semantics<parallel>], iteration_bounds = array<i64: 1, 1>, scalar_prefetch = 0 : i64, scratch_operands = 0 : i64, tpu.core_type = #tpu.core_type<tc>, window_params = [{transform_indices = @transform_0, window_bounds = array<i64: 8, 256>}, {transform_indices = @transform_1, window_bounds = array<i64: 8, 1>}, {transform_indices = @transform_2, window_bounds = array<i64: 8, 256>}, {transform_indices = @transform_3, window_bounds = array<i64: 8, 256>}, {transform_indices = @transform_4, window_bounds = array<i64: 1, 1, 8, 128>}]} {
    %c0 = arith.constant 0 : index
    %c0_0 = arith.constant 0 : index
    %0 = vector.load %arg2[%c0, %c0_0] : memref<8x256xf32, #tpu.memory_space<vmem>>, vector<8x256xf32>
    %cst = arith.constant 0.000000e+00 : f32
    %1 = vector.broadcast %cst : f32 to vector<8x1xf32>
    %c0_1 = arith.constant 0 : index
    %c0_2 = arith.constant 0 : index
    %2 = vector.load %arg4[%c0_1, %c0_2] : memref<8x256xf32, #tpu.memory_space<vmem>>, vector<8x256xf32>
    %3 = arith.subf %2, %0 : vector<8x256xf32>
    %4 = arith.mulf %3, %3 : vector<8x256xf32>
    %cst_3 = arith.constant dense<0.000000e+00> : vector<8xf32>
    %5 = vector.multi_reduction <add>, %4, %cst_3 [1] : vector<8x256xf32> to vector<8xf32>
    %6 = vector.shape_cast %5 : vector<8xf32> to vector<8x1xf32>
    %7 = arith.addf %1, %6 : vector<8x1xf32>
    %c0_4 = arith.constant 0 : index
    %c0_5 = arith.constant 0 : index
    %8 = vector.load %arg5[%c0_4, %c0_5] : memref<8x256xf32, #tpu.memory_space<vmem>>, vector<8x256xf32>
    %9 = arith.subf %8, %0 : vector<8x256xf32>
    %10 = arith.mulf %9, %9 : vector<8x256xf32>
    %cst_6 = arith.constant dense<0.000000e+00> : vector<8xf32>
    %11 = vector.multi_reduction <add>, %10, %cst_6 [1] : vector<8x256xf32> to vector<8xf32>
    %12 = vector.shape_cast %11 : vector<8xf32> to vector<8x1xf32>
    %13 = arith.addf %7, %12 : vector<8x1xf32>
    %c0_7 = arith.constant 0 : index
    %c0_8 = arith.constant 0 : index
    %14 = vector.load %arg3[%c0_7, %c0_8] : memref<8x1xf32, #tpu.memory_space<vmem>>, vector<8x1xf32>
    %15 = arith.mulf %14, %14 : vector<8x1xf32>
    %16 = arith.mulf %13, %15 : vector<8x1xf32>
    %17 = vector.shape_cast %16 : vector<8x1xf32> to vector<1x8x1xf32>
    %cst_9 = arith.constant dense<0.000000e+00> : vector<1xf32>
    %18 = vector.multi_reduction <add>, %17, %cst_9 [1, 2] : vector<1x8x1xf32> to vector<1xf32>
    %19 = vector.shape_cast %18 : vector<1xf32> to vector<1x1x1xf32>
    %20 = vector.extract %19[0, 0, 0] : f32 from vector<1x1x1xf32>
    %21 = vector.broadcast %20 : f32 to vector<1x1x8x128xf32>
    %c0_10 = arith.constant 0 : index
    %c0_11 = arith.constant 0 : index
    %c0_12 = arith.constant 0 : index
    %c0_13 = arith.constant 0 : index
    %22 = vector.load %arg6[%c0_10, %c0_11, %c0_12, %c0_13] : memref<1x1x8x128xf32, #tpu.memory_space<vmem>>, vector<1x1x8x128xf32>
    tpu.vector_store %arg6[%c0_10, %c0_11, %c0_12, %c0_13], %21 {strides = array<i32>} : memref<1x1x8x128xf32, #tpu.memory_space<vmem>>, vector<1x1x8x128xf32>,
    return
  }
  func.func @transform_0(%arg0: i32, %arg1: i32) -> (i32, i32) {
    %c0_i32 = arith.constant 0 : i32
    return %arg0, %arg1 : i32, i32
  }
  func.func @transform_1(%arg0: i32, %arg1: i32) -> (i32, i32) {
    %c0_i32 = arith.constant 0 : i32
    %c0_i32_0 = arith.constant 0 : i32
    return %arg0, %c0_i32 : i32, i32
  }
  func.func @transform_2(%arg0: i32, %arg1: i32) -> (i32, i32) {
    %c0_i32 = arith.constant 0 : i32
    return %arg0, %arg1 : i32, i32
  }
  func.func @transform_3(%arg0: i32, %arg1: i32) -> (i32, i32) {
    %c0_i32 = arith.constant 0 : i32
    return %arg0, %arg1 : i32, i32
  }
  func.func @transform_4(%arg0: i32, %arg1: i32) -> (i32, i32, i32, i32) {
    %c0_i32 = arith.constant 0 : i32
    %c0_i32_0 = arith.constant 0 : i32
    %c0_i32_1 = arith.constant 0 : i32
    return %arg0, %arg1, %c0_i32, %c0_i32_0 : i32, i32, i32, i32
  }
}

</mosaic_0001>

<bundles_post_ra>
// kernel: tpu_custom_call.1
= control target key start
LH: loop header
LB: loop body
LE: loop exit
PB: predicated region body
PF: predicated region fallthrough
CT: control target
= control target key end

     0   :  { %9 = vsyncpa [#allocation3], 0  ;;  %s243_s0 = inlined_call_operand.hbm [shape: f32[8,256], index: 0, kind: input, shape index: {}]   ;;  %s244_s1 = inlined_call_operand.vmem [shape: f32[8,1], index: 1, kind: input, shape index: {}]   ;;  %s245_s2 = inlined_call_operand.hbm [shape: f32[8,256], index: 2, kind: input, shape index: {}]   ;;  %s246_s3 = inlined_call_operand.hbm [shape: f32[8,256], index: 3, kind: input, shape index: {}]   ;;  %s247_s4 = inlined_call_operand.hbm [shape: f32[1,1,8,128], index: 4, kind: output, shape index: {}]  }
   0x1   :  { %10 = vsyncpa [#allocation6], 0 }
   0x2   :  { %11 = vsyncpa [#allocation4], 0  ;;  %s199_s15 = smov [#allocation5]   ;;  %s200_s17 = smov [#allocation2]  }
   0x3   :  { %s30_s16 = sshll.u32 %s199_s15, 4  ;;  %s18_s18 = sshll.u32 %s200_s17, 4  ;;  %s31_s16 = int_to_ptr.vmem [resolvable:$true] %s30_s16  ;;  %s19_s18 = int_to_ptr.vmem [resolvable:$true] %s18_s18 }
   0x4   :  { %s121_s19 = scalar_lea.vmem %s31_s16, 256  ;;  %p126_p1 = scmp.lt.s32.totalorder %s31_s16, %s31_s16 }
   0x5   :  { %p122_p0 = scmp.ne.s32.totalorder %s31_s16, %s121_s19  ;;  %p127_p2 = scmp.lt.s32.totalorder %s121_s19, %s121_s19 }
   0x7   :  { %p128_p3 = por %p127_p2, %p126_p1 }
   0x9   :  { %p129_p4 = pnand %p128_p3, %p122_p0 }
   0xb   :  { %132 = shalt.err (!%p129_p4)
}
   0xc   :  { %33 = dma.hbm_to_vmem [thread:$0]  %s245_s2, 256, %s31_s16, [#allocation6]  }
   0xd   :  { %s141_s22 = scalar_lea.vmem %s19_s18, 256  ;;  %p146_p6 = scmp.lt.s32.totalorder %s19_s18, %s19_s18 }
   0xe   :  { %p142_p5 = scmp.ne.s32.totalorder %s19_s18, %s141_s22  ;;  %p147_p7 = scmp.lt.s32.totalorder %s141_s22, %s141_s22 }
  0x10   :  { %p148_p8 = por %p147_p7, %p146_p6 }
  0x12   :  { %p149_p9 = pnand %p148_p8, %p142_p5 }
  0x14   :  { %152 = shalt.err (!%p149_p9)
}
  0x15   :  { %21 = dma.hbm_to_vmem [thread:$0]  %s243_s0, 256, %s19_s18, [#allocation3]  }
  0x16   :  { %s201_s25 = smov [#allocation7]  }
  0x17   :  { %s40_s26 = sshll.u32 %s201_s25, 4  ;;  %s41_s26 = int_to_ptr.vmem [resolvable:$true] %s40_s26 }
  0x18   :  { %s161_s27 = scalar_lea.vmem %s41_s26, 256  ;;  %p166_p11 = scmp.lt.s32.totalorder %s41_s26, %s41_s26 }
  0x19   :  { %p162_p10 = scmp.ne.s32.totalorder %s41_s26, %s161_s27  ;;  %p167_p12 = scmp.lt.s32.totalorder %s161_s27, %s161_s27 }
  0x1b   :  { %p168_p13 = por %p167_p12, %p166_p11 }
  0x1d   :  { %p169_p0 = pnand %p168_p13, %p162_p10 }
  0x1f   :  { %172 = shalt.err (!%p169_p0)
}
  0x20   :  { %43 = dma.hbm_to_vmem [thread:$0]  %s246_s3, 256, %s41_s26, [#allocation6]  }
  0x21   :  { %193 = dma.done.wait [#allocation3], 256  }
  0x22   :  { %194 = vsyncadd [#allocation3], 4294967040 }
  0x23   :  { %195 = dma.done.wait [#allocation6], 512  }
  0x24   :  { %196 = vsyncadd [#allocation6], 4294966784  ;;  %v53_v0 = vld [vmem:[#allocation2] sm:$0xff]  ;;  %v54_v1 = vld [vmem:[#allocation2 + $0x8] sm:$0xff]  ;;  %vm78_vm0 = vcmask 7168   ;;  %s202_s29 = smov [#allocation8]  }
  0x25   :  { %v55_v2 = vld [vmem:[#allocation5] sm:$0xff]  ;;  %v56_v3 = vld [vmem:[#allocation5 + $0x8] sm:$0xff]  ;;  %v65_v5 = vld [vmem:[#allocation7] sm:$0xff]  ;;  %s97_s30 = sshll.u32 %s202_s29, 4  ;;  %s98_s30 = int_to_ptr.vmem [resolvable:$true] %s97_s30 }
  0x26   :  { %v57_v4 = vsub.f32 %v55_v2, %v53_v0  ;;  %v66_v6 = vld [vmem:[#allocation7 + $0x8] sm:$0xff]  ;;  %v58_v7 = vsub.f32 %v56_v3, %v54_v1  ;;  %v67_v8 = vsub.f32 %v65_v5, %v53_v0  ;;  %v75_v17 = vld [vmem:[%s244_s1] sm:$0xff]  ;;  %s173_s1 = scalar_lea.vmem %s98_s30, 128  ;;  %p178_p2 = scmp.lt.s32.totalorder %s98_s30, %s98_s30 }
  0x27   :  { %v68_v9 = vsub.f32 %v66_v6, %v54_v1  ;;  %v76_v18 = vmul.f32 %v75_v17, %v75_v17  ;;  %p174_p1 = scmp.ne.s32.totalorder %s98_s30, %s173_s1  ;;  %p179_p3 = scmp.lt.s32.totalorder %s173_s1, %s173_s1 }
  0x28   :  { %v59_v10 = vmul.f32 %v57_v4, %v57_v4  ;;  %v60_v11 = vmul.f32 %v58_v7, %v58_v7  ;;  %v69_v12 = vmul.f32 %v67_v8, %v67_v8 }
  0x29   :  { %v70_v13 = vmul.f32 %v68_v9, %v68_v9  ;;  %p180_p4 = por %p179_p3, %p178_p2 }
  0x2a   :  { %v61_v14 = vadd.f32 %v60_v11, %v59_v10 }
  0x2b   :  { %v71_v15 = vadd.f32 %v70_v13, %v69_v12  ;;  %p181_p5 = pnand %p180_p4, %p174_p1 }
  0x2c   :  { %62 = vadd.xlane.f32.xlu0 %v61_v14 }
  0x30   :  { %72 = vadd.xlane.f32.xlu0 %v71_v15 }
  0xb5   :  { %v63_v16 = vpop.xlane.xlu0 %62 }
  0xb9   :  { %v73_v19 = vpop.xlane.xlu0 %72 }
  0xba   :  { %v74_v20 = vadd.f32 %v73_v19, %v63_v16 }
  0xbc   :  { %v77_v21 = vmul.f32 %v76_v18, %v74_v20 }
  0xbe   :  { %v79_v22 = vsel %vm78_vm0, %v77_v21, 0.0 }
  0xbf   :  { %80 = vadd.xlane.f32.xlu1 %v79_v22 }
 0x148   :  { %v81_v23 = vpop.xlane.xlu1 %80 }
 0x149   :  { %v82_v24 = vrot.slane %v81_v23, 4 }
 0x14b   :  { %v83_v25 = vadd.f32 %v82_v24, %v81_v23 }
 0x14d   :  { %v84_v26 = vrot.slane %v83_v25, 2 }
 0x14f   :  { %v85_v27 = vadd.f32 %v84_v26, %v83_v25 }
 0x151   :  { %v86_v28 = vrot.slane %v85_v27, 1 }
 0x153   :  { %v87_v29 = vadd.f32 %v86_v28, %v85_v27 }
 0x155   :  { %107 = vpush %v87_v29 }
 0x186   :  { %s108_s5 = spop %107 }
 0x187   :  { %v89_v30 = vstv %s108_s5 }
 0x188   :  { %90 = vst [vmem:[#allocation8] sm:$0xff] %v89_v30 }
 0x189   :  { %184 = shalt.err (!%p181_p5)
}
 0x18a   :  { %100 = dma.vmem_to_hbm [thread:$0]  %s98_s30, 128, %s247_s4, [#allocation4]  }
 0x18b   :  { %197 = dma.done.wait [#allocation4], 128  }
 0x18c   :  { %198 = vsyncadd [#allocation4], 4294967168 }
 0x18d   :  { %104 = vsyncpa [#allocation3], 1 }
 0x18e   :  { %105 = vsyncpa [#allocation6], 1 }
 0x18f   :  { %106 = vsyncpa [#allocation4], 1 }

</bundles_post_ra>
